<compile_context>
chip_gen: v7x
topology: tpu7x:2x2x1
jax: 0.10.0
libtpu: 0.0.40
codegen_flags: <defaults>
</compile_context>

<pallas_src>
import jax
import jax.numpy as jnp
import numpy as np
from jax.experimental import pallas as pl
from jax.experimental.pallas import tpu as pltpu


def _round_up(x, m):
    return ((x + m - 1) // m) * m


def _default_tn_cap():
    # v7x (~3.2 TB/s HBM, 64 MiB VMEM per TC) needs a bigger batch tile to keep
    # per-step DMA >> the ~0.35 us fixed grid-step overhead; v5e/v6e do fine at
    # 4096 (X 1 MiB + out 2 MiB per block, double-buffered ~6 MiB).
    try:
        vmem = pltpu.get_tpu_info().vmem_capacity_bytes
        return 8192 if vmem <= 64 * 1024 * 1024 else 4096
    except Exception:  # pragma: no cover - conservative fallback
        return 4096


def _choose_tn(n, tn_cap):
    if n >= 16:
        # At least two grid steps so the "parallel" batch axis can shard across
        # both TensorCores on v7x (no-op on single-TC v5e/v6e).
        tn = _round_up(-(-n // 2), 8)
    else:
        tn = _round_up(max(n, 1), 8)
    return max(8, min(tn_cap, tn))


def fold_gconv_params(w, b, a, *, K, C_out):
    """Fold Conv1d weight/bias + adjacency into one fused GEMM operator.

    Hoist/cache this when weights and A are reused across forward calls.
    Returns (m, bias_f) with m: (C_in*V, C_out*V) f32, bias_f: (1, C_out*V) f32.
    """
    KC, C_in = w.shape
    assert KC == K * C_out
    V = a.shape[-1]
    w_kci = w.reshape(K, C_out, C_in)                         # rows of W are k-major
    m = jnp.einsum("kci,kvw->ivcw", w_kci, a).reshape(C_in * V, C_out * V)
    b_kc = b.reshape(K, C_out)
    a_colsum = jnp.sum(a, axis=1)                             # (K, V): sum_v A[k,v,w]
    bias = jnp.einsum("kc,kw->cw", b_kc, a_colsum).reshape(1, C_out * V)
    return m.astype(jnp.float32), bias.astype(jnp.float32)


def _gconv_fused_kernel(x_ref, m_ref, b_ref, out_ref):
    # x_ref:   (TN, C_in*V)       tile of flattened inputs
    # m_ref:   (C_in*V, C_out*V)  fused weight*adjacency operator (grid-invariant)
    # b_ref:   (1, C_out*V)       fused bias (grid-invariant, always f32)
    # out_ref: (TN, C_out*V)      lane-dense output tile
    out_ref[...] = (
        jnp.dot(x_ref[...], m_ref[...], preferred_element_type=jnp.float32)
        + b_ref[...]
    ).astype(out_ref.dtype)


def gconv(x, w, b, a, *, K, C_out, folded=None, tn_cap=None,
          stream_dtype=jnp.float32, use_pallas=None):
    """x: (N, C_in, V) f32; w: (K*C_out, C_in); b: (K*C_out,); a: (K, V, V).

    folded:       optional precomputed (m, bias) from fold_gconv_params.
    stream_dtype: dtype X and M are streamed in (f32 default; bf16 halves HBM
                  traffic, accumulation stays f32).
    use_pallas:   None = auto (plain XLA dot for tiny N), True/False = forced.
    Returns (out, a) with out: (N, C_out, V) f32.
    """
    N, C_in, V = x.shape
    if folded is None:
        m, bias = fold_gconv_params(w, b, a, K=K, C_out=C_out)
    else:
        m, bias = folded

    x_flat = x.reshape(N, C_in * V)
    out_dtype = jnp.float32

    if use_pallas is None:
        # Tiny-N fast path: pallas_call / grid setup overhead dominates below
        # a few thousand flattened rows; a single fused XLA dot is faster there.
        use_pallas = N >= 64
    if not use_pallas:
        out_flat = (jnp.dot(x_flat.astype(stream_dtype), m.astype(stream_dtype),
                            preferred_element_type=jnp.float32) + bias)
        return out_flat.astype(out_dtype).reshape(N, C_out, V), a

    if tn_cap is None:
        tn_cap = _default_tn_cap()
    tn = _choose_tn(N, tn_cap)
    grid = (pl.cdiv(N, tn),)

    x_s = x_flat.astype(stream_dtype)
    m_s = m.astype(stream_dtype)

    cost = pl.CostEstimate(
        flops=2 * N * (C_in * V) * (C_out * V),
        transcendentals=0,
        bytes_accessed=(x_s.size * x_s.dtype.itemsize
                        + m_s.size * m_s.dtype.itemsize
                        + bias.size * bias.dtype.itemsize
                        + N * C_out * V * jnp.dtype(out_dtype).itemsize),
    )

    out_flat = pl.pallas_call(
        _gconv_fused_kernel,
        out_shape=jax.ShapeDtypeStruct((N, C_out * V), out_dtype),
        grid_spec=pltpu.PrefetchScalarGridSpec(
            num_scalar_prefetch=0,
            grid=grid,
            in_specs=[
                pl.BlockSpec((tn, C_in * V), lambda n: (n, 0)),
                pl.BlockSpec((C_in * V, C_out * V), lambda n: (0, 0)),
                pl.BlockSpec((1, C_out * V), lambda n: (0, 0)),
            ],
            out_specs=pl.BlockSpec((tn, C_out * V), lambda n: (n, 0)),
        ),
        compiler_params=pltpu.CompilerParams(
            dimension_semantics=("parallel",),
            vmem_limit_bytes=32 * 1024 * 1024,
        ),
        cost_estimate=cost,
    )(x_s, m_s, bias)

    return out_flat.reshape(N, C_out, V), a


def gconv_ref(x, w, b, a, *, K, C_out):
    N, C_in, V = x.shape
    y = jnp.einsum("oi,niv->nov", w, x) + b[None, :, None]   # (N, K*C_out, V)
    y = y.reshape(N, K, C_out, V)
    return jnp.einsum("nkcv,kvw->ncw", y, a)


if __name__ == "__main__":
    # Small deterministic setup: in_channels=4, out_channels=8,
    # kernel_size=[3, 1] -> gcn_kernel_size K=3, pointwise Conv1d, V=16 nodes.
    C_in, C_out, K, V = 4, 8, 3, 16

    key = jax.random.PRNGKey(0)
    kx, kw, kb, ka, kx2 = jax.random.split(key, 5)

    bound = 1.0 / np.sqrt(C_in)
    w = jax.random.uniform(kw, (K * C_out, C_in), jnp.float32, -bound, bound)
    b = jax.random.uniform(kb, (K * C_out,), jnp.float32, -bound, bound)
    a = jax.random.normal(ka, (K, V, V), dtype=jnp.float32) * 0.1

    # Fold once (cacheable across forward calls).
    folded = fold_gconv_params(w, b, a, K=K, C_out=C_out)
    folded = jax.tree_util.tree_map(jax.block_until_ready, folded)

    # 1) Small batch (N=2), Pallas path forced (ragged single block, masked store).
    x = jax.random.normal(kx, (2, C_in, V), dtype=jnp.float32)
    out, a_out = gconv(x, w, b, a, K=K, C_out=C_out, folded=folded,
                       use_pallas=True)
    out = jax.block_until_ready(out)
    ref = gconv_ref(x, w, b, a, K=K, C_out=C_out)
    np.testing.assert_allclose(np.asarray(out), np.asarray(ref),
                               rtol=1e-3, atol=1e-3)
    assert out.shape == (2, C_out, V)
    assert a_out.shape == (K, V, V)

    # 2) Larger non-multiple-of-8 batch -> multiple grid steps + ragged last block.
    x2 = jax.random.normal(kx2, (300, C_in, V), dtype=jnp.float32)
    out2, _ = gconv(x2, w, b, a, K=K, C_out=C_out, folded=folded,
                    use_pallas=True)
    out2 = jax.block_until_ready(out2)
    ref2 = gconv_ref(x2, w, b, a, K=K, C_out=C_out)
    np.testing.assert_allclose(np.asarray(out2), np.asarray(ref2),
                               rtol=1e-3, atol=1e-3)

    # 3) bf16-streaming option (halves HBM traffic; f32 accumulate), looser tol.
    out3, _ = gconv(x2, w, b, a, K=K, C_out=C_out, folded=folded,
                    use_pallas=True, stream_dtype=jnp.bfloat16)
    out3 = jax.block_until_ready(out3)
    np.testing.assert_allclose(np.asarray(out3), np.asarray(ref2),
                               rtol=2e-2, atol=2e-2)

    print("KERNEL_OK")
</pallas_src>

<mosaic_0001>
module attributes {stable_mosaic.version = 11 : i64} {
  func.func @_gconv_fused_kernel(%arg0: i32, %arg1: memref<8x64xf32, #tpu.memory_space<vmem>>, %arg2: memref<64x128xf32, #tpu.memory_space<vmem>>, %arg3: memref<1x128xf32, #tpu.memory_space<vmem>>, %arg4: memref<8x128xf32, #tpu.memory_space<vmem>>) attributes {dimension_semantics = [#tpu.dimension_semantics<parallel>], iteration_bounds = array<i64: 1>, scalar_prefetch = 0 : i64, scratch_operands = 0 : i64, tpu.core_type = #tpu.core_type<tc>, window_params = [{transform_indices = @transform_0, window_bounds = array<i64: 8, 64>}, {pipeline_mode = #tpu.pipeline_mode<synchronous>, transform_indices = @transform_1, window_bounds = array<i64: 64, 128>}, {pipeline_mode = #tpu.pipeline_mode<synchronous>, transform_indices = @transform_2, window_bounds = array<i64: 1, 128>}, {transform_indices = @transform_3, window_bounds = array<i64: 8, 128>}]} {
    %c0 = arith.constant 0 : index
    %c0_0 = arith.constant 0 : index
    %0 = vector.load %arg1[%c0, %c0_0] : memref<8x64xf32, #tpu.memory_space<vmem>>, vector<8x64xf32>
    %c0_1 = arith.constant 0 : index
    %c0_2 = arith.constant 0 : index
    %1 = vector.load %arg2[%c0_1, %c0_2] : memref<64x128xf32, #tpu.memory_space<vmem>>, vector<64x128xf32>
    %cst = arith.constant dense<0.000000e+00> : vector<8x128xf32>
    %2 = tpu.matmul %0, %1, %cst {dimension_numbers = #tpu.dot_dimension_numbers<[1], [0], [0], [1], [0, 0, 1, 1], [], []>} : vector<8x64xf32>, vector<64x128xf32>, vector<8x128xf32> -> vector<8x128xf32>
    %c0_3 = arith.constant 0 : index
    %c0_4 = arith.constant 0 : index
    %3 = vector.load %arg3[%c0_3, %c0_4] : memref<1x128xf32, #tpu.memory_space<vmem>>, vector<1x128xf32>
    %4 = vector.broadcast %3 : vector<1x128xf32> to vector<8x128xf32>
    %5 = arith.addf %2, %4 : vector<8x128xf32>
    %c0_5 = arith.constant 0 : index
    %c0_6 = arith.constant 0 : index
    %6 = vector.load %arg4[%c0_5, %c0_6] : memref<8x128xf32, #tpu.memory_space<vmem>>, vector<8x128xf32>
    tpu.vector_store %arg4[%c0_5, %c0_6], %5 {strides = array<i32>} : memref<8x128xf32, #tpu.memory_space<vmem>>, vector<8x128xf32>,
    return
  }
  func.func @transform_0(%arg0: i32) -> (i32, i32) {
    %c0_i32 = arith.constant 0 : i32
    %c0_i32_0 = arith.constant 0 : i32
    return %arg0, %c0_i32 : i32, i32
  }
  func.func @transform_1(%arg0: i32) -> (i32, i32) {
    %c0_i32 = arith.constant 0 : i32
    %c0_i32_0 = arith.constant 0 : i32
    %c0_i32_1 = arith.constant 0 : i32
    return %c0_i32, %c0_i32_0 : i32, i32
  }
  func.func @transform_2(%arg0: i32) -> (i32, i32) {
    %c0_i32 = arith.constant 0 : i32
    %c0_i32_0 = arith.constant 0 : i32
    %c0_i32_1 = arith.constant 0 : i32
    return %c0_i32, %c0_i32_0 : i32, i32
  }
  func.func @transform_3(%arg0: i32) -> (i32, i32) {
    %c0_i32 = arith.constant 0 : i32
    %c0_i32_0 = arith.constant 0 : i32
    return %arg0, %c0_i32 : i32, i32
  }
}

</mosaic_0001>

<bundles_post_ra>
// kernel: tpu_custom_call.1
= control target key start
LH: loop header
LB: loop body
LE: loop exit
PB: predicated region body
PF: predicated region fallthrough
CT: control target
= control target key end

     0   :  { %8 = vsyncpa [#allocation3], 0  ;;  %s351_s0 = inlined_call_operand.hbm [shape: f32[2,64], index: 0, kind: input, shape index: {}]   ;;  %s352_s1 = inlined_call_operand.hbm [shape: f32[64,128], index: 1, kind: input, shape index: {}]   ;;  %s353_s2 = inlined_call_operand.vmem [shape: f32[1,128], index: 2, kind: input, shape index: {}]   ;;  %s354_s3 = inlined_call_operand.hbm [shape: f32[2,128], index: 3, kind: output, shape index: {}]  }
   0x1   :  { %9 = vsyncpa [#allocation6], 0 }
   0x2   :  { %10 = vsyncpa [#allocation4], 0 }
   0x3   :  { %15 = vsyncadd [#allocation3], 96  ;;  %s276_s12 = smov [#allocation2]   ;;  %s204_s16 = scalar_lea.hbm %s351_s0, 32 }
   0x4   :  { %s16_s13 = sshll.u32 %s276_s12, 4  ;;  %p205_p0 = scmp.ne.s32.totalorder %s351_s0, %s204_s16  ;;  %s17_s13 = int_to_ptr.vmem [resolvable:$true] %s16_s13 }
   0x5   :  { %p208_p1 = scmp.lt.u32.totalorder %s204_s16, %s351_s0 }
   0x7   :  { %p210_p2 = pnand %p208_p1, %p205_p0 }
   0x9   :  { %213 = shalt.err (!%p210_p2)
}
   0xa   :  { %s214_s21 = scalar_lea.vmem %s17_s13, 32  ;;  %s218_s22 = scalar_lea.vmem %s17_s13, 128 }
   0xb   :  { %p215_p3 = scmp.ne.s32.totalorder %s17_s13, %s214_s21  ;;  %p219_p4 = scmp.lt.s32.totalorder %s17_s13, %s17_s13 }
   0xc   :  { %p220_p5 = scmp.lt.s32.totalorder %s218_s22, %s214_s21 }
   0xe   :  { %p221_p6 = por %p220_p5, %p219_p4 }
  0x10   :  { %p222_p7 = pnand %p221_p6, %p215_p3 }
  0x12   :  { %225 = shalt.err (!%p222_p7)
}
  0x13   :  { %s277_s23 = smov 32   ;;  %s278_s24 = smov 2  }
  0x14   :  { %22 = dma.hbm_to_vmem [thread:$0]  %s351_s0, 32, %s17_s13, [#allocation3], %s277_s23, %s277_s23, %s278_s24  }
  0x15   :  { %s279_s27 = smov [#allocation5]   ;;  %s226_s4 = scalar_lea.hbm %s352_s1, 1024 }
  0x16   :  { %s28_s28 = sshll.u32 %s279_s27, 4  ;;  %p227_p8 = scmp.ne.s32.totalorder %s352_s1, %s226_s4  ;;  %s29_s28 = int_to_ptr.vmem [resolvable:$true] %s28_s28 }
  0x17   :  { %p230_p9 = scmp.lt.u32.totalorder %s226_s4, %s352_s1 }
  0x19   :  { %p232_p10 = pnand %p230_p9, %p227_p8 }
  0x1b   :  { %235 = shalt.err (!%p232_p10)
}
  0x1c   :  { %s236_s9 = scalar_lea.vmem %s29_s28, 1024  ;;  %p241_p12 = scmp.lt.s32.totalorder %s29_s28, %s29_s28 }
  0x1d   :  { %p237_p11 = scmp.ne.s32.totalorder %s29_s28, %s236_s9  ;;  %p242_p13 = scmp.lt.s32.totalorder %s236_s9, %s236_s9 }
  0x1f   :  { %p243_p0 = por %p242_p13, %p241_p12 }
  0x21   :  { %p244_p1 = pnand %p243_p0, %p237_p11 }
  0x23   :  { %247 = shalt.err (!%p244_p1)
}
  0x24   :  { %s280_s0 = smov 128   ;;  %s281_s10 = smov 8  }
  0x25   :  { %34 = dma.hbm_to_vmem [thread:$0]  %s352_s1, 1024, %s29_s28, [#allocation6], %s280_s0, %s280_s0, %s281_s10  }
  0x26   :  { %270 = dma.done.wait [#allocation3], 128  }
  0x27   :  { %271 = vsyncadd [#allocation3], 4294967168 }
  0x28   :  { %272 = dma.done.wait [#allocation6], 1024  }
  0x29   :  { %273 = vsyncadd [#allocation6], 4294966272  ;;  %v282_v0 = vmov 0.0|0.0   ;;  %vm283_vm0 = vmmov 0   ;;  %v284_v1 = vmov 0.0   ;;  %v44_v2 = vld [vmem:[#allocation5] sm:$0xff] }
  0x2a   :  { %182 = vmatprep.subr.bf16.mxu0 %v282_v0  ;;  %179 = vmatprep.mubr.msk.f32.mxu0 %vm283_vm0, %v284_v1  ;;  %v45_v3 = vld [vmem:[#allocation5 + $0x8] sm:$0xff]  ;;  %v46_v4 = vld [vmem:[#allocation5 + $0x10] sm:$0xff]  ;;  %v47_v6 = vld [vmem:[#allocation5 + $0x18] sm:$0xff]  ;;  %vm59_vm1 = vcmask 523264  }
  0x2b   :  { %v183_v5 = vpack.c.bf16 %v45_v3, %v44_v2  ;;  %v186_v7 = vpack.c.bf16 %v47_v6, %v46_v4  ;;  %v48_v8 = vld [vmem:[#allocation5 + $0x20] sm:$0xff]  ;;  %v49_v9 = vld [vmem:[#allocation5 + $0x28] sm:$0xff]  ;;  %v50_v11 = vld [vmem:[#allocation5 + $0x30] sm:$0xff] }
  0x2c   :  { %v189_v10 = vpack.c.bf16 %v49_v9, %v48_v8  ;;  %v51_v12 = vld [vmem:[#allocation5 + $0x38] sm:$0xff] }
  0x2d   :  { %184 = vmatpush3.bf16.msra.mxu0 %v183_v5  ;;  %v192_v13 = vpack.c.bf16 %v51_v12, %v50_v11  ;;  %v43_v14 = vld [vmem:[#allocation2] sm:$0xff] }
  0x2e   :  { %185 = vmatprep.subr.bf16.mxu0 %v282_v0  ;;  %v152_v15 = vld [vmem:[%s353_s2] ss:$0 sm:$0xff] }
  0x31   :  { %187 = vmatpush3.bf16.msra.mxu0 %v186_v7 }
  0x32   :  { %188 = vmatprep.subr.bf16.mxu0 %v282_v0 }
  0x35   :  { %190 = vmatpush3.bf16.msra.mxu0 %v189_v10 }
  0x36   :  { %191 = vmatprep.subr.bf16.mxu0 %v282_v0 }
  0x39   :  { %193 = vmatpush3.bf16.msra.mxu0 %v192_v13 }
  0x3c   :  { %180 = vmatmul.mubr.msk.f32.vlgmr.msra.gmra.mrb[0].mxu0 %vm59_vm1, %v43_v14 }
 0x10f   :  { %v129_v16 = vpop.f32.mrb[0].mxu0 }
 0x110   :  { %v130_v17 = vadd.f32 %v152_v15, %v129_v16  ;;  %v181_v18 = vpop.f32.mrb[1].mxu0 }
 0x112   :  { %133 = vst [vmem:[#allocation7] sm:$0xff] %v130_v17 }
 0x113   :  { %138 = vsyncadd [#allocation4], 96  ;;  %s285_s14 = smov [#allocation7]  }
 0x114   :  { %s139_s15 = sshll.u32 %s285_s14, 4  ;;  %s140_s15 = int_to_ptr.vmem [resolvable:$true] %s139_s15 }
 0x115   :  { %s248_s16 = scalar_lea.vmem %s140_s15, 32  ;;  %s252_s17 = scalar_lea.vmem %s140_s15, 128 }
 0x116   :  { %p249_p2 = scmp.ne.s32.totalorder %s140_s15, %s248_s16  ;;  %p253_p3 = scmp.lt.s32.totalorder %s140_s15, %s140_s15 }
 0x117   :  { %p254_p4 = scmp.lt.s32.totalorder %s252_s17, %s248_s16 }
 0x119   :  { %p255_p5 = por %p254_p4, %p253_p3 }
 0x11b   :  { %p256_p6 = pnand %p255_p5, %p249_p2 }
 0x11d   :  { %259 = shalt.err (!%p256_p6)
}
 0x11e   :  { %s260_s2 = scalar_lea.hbm %s354_s3, 32 }
 0x11f   :  { %p261_p7 = scmp.ne.s32.totalorder %s354_s3, %s260_s2  ;;  %p264_p8 = scmp.lt.u32.totalorder %s260_s2, %s354_s3 }
 0x121   :  { %p266_p9 = pnand %p264_p8, %p261_p7 }
 0x123   :  { %269 = shalt.err (!%p266_p9)
}
 0x124   :  { %145 = dma.vmem_to_hbm [thread:$0]  %s140_s15, 32, %s354_s3, [#allocation4], %s277_s23, %s277_s23, %s278_s24  }
 0x125   :  { %274 = dma.done.wait [#allocation4], 128  }
 0x126   :  { %275 = vsyncadd [#allocation4], 4294967168 }
 0x127   :  { %149 = vsyncpa [#allocation3], 1 }
 0x128   :  { %150 = vsyncpa [#allocation6], 1 }
 0x129   :  { %151 = vsyncpa [#allocation4], 1 }

</bundles_post_ra>
